<compile_context>
chip_gen: v7x
topology: tpu7x:2x2x1
jax: 0.10.0
libtpu: 0.0.40
codegen_flags: <defaults>
</compile_context>

<pallas_src>
import functools

import jax
import jax.numpy as jnp
from jax.experimental import pallas as pl
from jax.experimental.pallas import tpu as pltpu


def _soft_ce_kernel(x_ref, t_ref, o_ref, *, n_rows, tile_n):
    # x_ref, t_ref: (tile_n, C) blocks; o_ref: (tile_n, 1) per-row losses.
    x = x_ref[...].astype(jnp.float32)
    t = t_ref[...].astype(jnp.float32)

    # Numerically stable log-softmax pieces along the class (lane) axis.
    # All row statistics kept 2D (tile_n, 1) to stay in native vreg layout.
    m = jnp.max(x, axis=-1, keepdims=True)
    xm = x - m  # reused by both lse and the weighted sum
    lse = jnp.log(jnp.sum(jnp.exp(xm), axis=-1, keepdims=True))

    # -sum_c t*log_softmax(x) = lse*sum_c(t) - sum_c(t*(x-m))   (exact, well conditioned)
    sum_t = jnp.sum(t, axis=-1, keepdims=True)
    sum_txm = jnp.sum(t * xm, axis=-1, keepdims=True)
    loss = lse * sum_t - sum_txm

    # Mask rows of the (possibly partial) last tile that fall past the true
    # batch size: their reads are unspecified and must contribute exactly 0.
    row = pl.program_id(0) * tile_n + jax.lax.broadcasted_iota(
        jnp.int32, loss.shape, 0)
    o_ref[...] = jnp.where(row < n_rows, loss, 0.0)


def _round_up(v, m):
    return ((v + m - 1) // m) * m


def _vmem_capacity_bytes():
    try:
        cap = getattr(pltpu.get_tpu_info(), "vmem_capacity_bytes", None)
        if cap:
            return int(cap)
    except Exception:
        pass
    return 64 * 1024 * 1024  # conservative: v7x per-TensorCore VMEM


def soft_target_cross_entropy(x, target):
    """x, target: (..., C). Returns scalar float32 loss (mean over all rows)."""
    assert x.shape == target.shape
    c = x.shape[-1]
    x2 = x.reshape(-1, c)
    t2 = target.reshape(-1, c)
    n = x2.shape[0]

    # ---- VMEM-aware tile sizing -------------------------------------------
    vmem_capacity = _vmem_capacity_bytes()
    budget = min(vmem_capacity // 2, 56 * 1024 * 1024)
    # Per tile row we hold: 2 pipeline buffers x (x block + t block) plus
    # ~4 live (tile_n, C) f32 temporaries inside the kernel body.
    bytes_per_row = 2 * c * (x2.dtype.itemsize + t2.dtype.itemsize) + 4 * c * 4
    max_rows = max(8, budget // bytes_per_row)
    rows_rounded = _round_up(n, 8)
    tile_n = max(8, min((max_rows // 8) * 8, rows_rounded))
    # Keep >= ~8 grid steps when the batch is big enough (v7x megacore sharding
    # of the "parallel" axis + DMA/compute overlap); never drop below 8 rows.
    min_steps = 8
    if rows_rounded >= min_steps * 8:
        tile_n = min(tile_n, max(8, ((rows_rounded // min_steps) // 8) * 8))
    # TODO(synk): vocab-scale C where even an (8, C) block exceeds VMEM would
    # need a C-axis grid with an online logsumexp; not required at these shapes.

    grid = (pl.cdiv(n, tile_n),)

    inputs_bytes = 2 * tile_n * c * (x2.dtype.itemsize + t2.dtype.itemsize)
    temps_bytes = 4 * tile_n * c * 4
    needed_vmem = inputs_bytes + temps_bytes + 4 * tile_n * 4 + (4 << 20)
    vmem_limit = int(min(max(needed_vmem, 32 * 1024 * 1024),
                         max(needed_vmem, vmem_capacity - 16 * 1024 * 1024)))

    cost = pl.CostEstimate(
        flops=6 * n * c,
        transcendentals=n * c,
        bytes_accessed=n * c * (x2.dtype.itemsize + t2.dtype.itemsize) + n * 4,
    )

    kernel = functools.partial(_soft_ce_kernel, n_rows=n, tile_n=tile_n)

    per_row = pl.pallas_call(
        kernel,
        out_shape=jax.ShapeDtypeStruct((n, 1), jnp.float32),
        grid_spec=pltpu.PrefetchScalarGridSpec(
            num_scalar_prefetch=0,
            grid=grid,
            in_specs=[
                pl.BlockSpec((tile_n, c), lambda i: (i, 0)),
                pl.BlockSpec((tile_n, c), lambda i: (i, 0)),
            ],
            out_specs=pl.BlockSpec((tile_n, 1), lambda i: (i, 0)),
        ),
        compiler_params=pltpu.CompilerParams(
            dimension_semantics=("parallel",),  # independent tiles -> megacore OK
            vmem_limit_bytes=vmem_limit,
        ),
        cost_estimate=cost,
    )(x2, t2)

    # Tiny (N, 1) reduction done in the wrapper.
    return jnp.sum(per_row) / jnp.float32(n)


def _reference(x, target):
    logp = jax.nn.log_softmax(x.astype(jnp.float32), axis=-1)
    return jnp.mean(jnp.sum(-target.astype(jnp.float32) * logp, axis=-1))


if __name__ == "__main__":
    key = jax.random.PRNGKey(0)
    k1, k2 = jax.random.split(key)

    # Small demo shapes; N deliberately NOT a multiple of 8 to exercise the
    # partial-tile masking path (no host-side padding copies anymore).
    N, C = 12, 32
    x = jax.random.normal(k1, (N, C), dtype=jnp.float32)
    # Soft targets: a probability distribution per row (mixup / label-smoothing style).
    target = jax.nn.softmax(jax.random.normal(k2, (N, C), dtype=jnp.float32), axis=-1)

    loss = jax.block_until_ready(soft_target_cross_entropy(x, target))
    ref = jax.block_until_ready(_reference(x, target))
    assert jnp.allclose(loss, ref, rtol=1e-5, atol=1e-5), (loss, ref)

    # Also check a bf16 path (halves HBM traffic; kernel computes in f32).
    loss_bf16 = jax.block_until_ready(
        soft_target_cross_entropy(x.astype(jnp.bfloat16), target.astype(jnp.bfloat16))
    )
    ref_bf16 = jax.block_until_ready(
        _reference(x.astype(jnp.bfloat16), target.astype(jnp.bfloat16))
    )
    assert jnp.allclose(loss_bf16, ref_bf16, rtol=1e-2, atol=1e-2), (loss_bf16, ref_bf16)

    print("KERNEL_OK")
</pallas_src>

<mosaic_0001>
module attributes {stable_mosaic.version = 11 : i64} {
  func.func @_soft_ce_kernel(%arg0: i32, %arg1: memref<16x32xf32, #tpu.memory_space<vmem>>, %arg2: memref<16x32xf32, #tpu.memory_space<vmem>>, %arg3: memref<16x1xf32, #tpu.memory_space<vmem>>) attributes {dimension_semantics = [#tpu.dimension_semantics<parallel>], iteration_bounds = array<i64: 1>, scalar_prefetch = 0 : i64, scratch_operands = 0 : i64, tpu.core_type = #tpu.core_type<tc>, window_params = [{transform_indices = @transform_0, window_bounds = array<i64: 16, 32>}, {transform_indices = @transform_1, window_bounds = array<i64: 16, 32>}, {transform_indices = @transform_2, window_bounds = array<i64: 16, 1>}]} {
    %c0 = arith.constant 0 : index
    %c0_0 = arith.constant 0 : index
    %0 = vector.load %arg1[%c0, %c0_0] : memref<16x32xf32, #tpu.memory_space<vmem>>, vector<16x32xf32>
    %c0_1 = arith.constant 0 : index
    %c0_2 = arith.constant 0 : index
    %1 = vector.load %arg2[%c0_1, %c0_2] : memref<16x32xf32, #tpu.memory_space<vmem>>, vector<16x32xf32>
    %cst = arith.constant dense<0xFF800000> : vector<16xf32>
    %2 = vector.multi_reduction <maximumf>, %0, %cst [1] : vector<16x32xf32> to vector<16xf32>
    %3 = vector.shape_cast %2 : vector<16xf32> to vector<16x1xf32>
    %4 = vector.broadcast %3 : vector<16x1xf32> to vector<16x32xf32>
    %5 = arith.subf %0, %4 : vector<16x32xf32>
    %6 = math.exp %5 : vector<16x32xf32>
    %cst_3 = arith.constant dense<0.000000e+00> : vector<16xf32>
    %7 = vector.multi_reduction <add>, %6, %cst_3 [1] : vector<16x32xf32> to vector<16xf32>
    %8 = vector.shape_cast %7 : vector<16xf32> to vector<16x1xf32>
    %9 = math.log %8 : vector<16x1xf32>
    %cst_4 = arith.constant dense<0.000000e+00> : vector<16xf32>
    %10 = vector.multi_reduction <add>, %1, %cst_4 [1] : vector<16x32xf32> to vector<16xf32>
    %11 = vector.shape_cast %10 : vector<16xf32> to vector<16x1xf32>
    %12 = arith.mulf %1, %5 : vector<16x32xf32>
    %cst_5 = arith.constant dense<0.000000e+00> : vector<16xf32>
    %13 = vector.multi_reduction <add>, %12, %cst_5 [1] : vector<16x32xf32> to vector<16xf32>
    %14 = vector.shape_cast %13 : vector<16xf32> to vector<16x1xf32>
    %15 = arith.mulf %9, %11 : vector<16x1xf32>
    %16 = arith.subf %15, %14 : vector<16x1xf32>
    %c16_i32 = arith.constant 16 : i32
    %17 = arith.muli %arg0, %c16_i32 : i32
    %18 = tpu.iota {dimensions = array<i32: 0>} : vector<16x1xi32>
    %19 = vector.broadcast %17 : i32 to vector<16x1xi32>
    %20 = arith.addi %19, %18 : vector<16x1xi32>
    %c12_i32 = arith.constant 12 : i32
    %21 = vector.broadcast %c12_i32 : i32 to vector<16x1xi32>
    %22 = arith.cmpi slt, %20, %21 : vector<16x1xi32>
    %cst_6 = arith.constant 0.000000e+00 : f32
    %23 = vector.broadcast %cst_6 : f32 to vector<16x1xf32>
    %24 = arith.select %22, %16, %23 : vector<16x1xi1>, vector<16x1xf32>
    %c0_7 = arith.constant 0 : index
    %c0_8 = arith.constant 0 : index
    %25 = vector.load %arg3[%c0_7, %c0_8] : memref<16x1xf32, #tpu.memory_space<vmem>>, vector<16x1xf32>
    tpu.vector_store %arg3[%c0_7, %c0_8], %24 {strides = array<i32>} : memref<16x1xf32, #tpu.memory_space<vmem>>, vector<16x1xf32>,
    return
  }
  func.func @transform_0(%arg0: i32) -> (i32, i32) {
    %c0_i32 = arith.constant 0 : i32
    %c0_i32_0 = arith.constant 0 : i32
    return %arg0, %c0_i32 : i32, i32
  }
  func.func @transform_1(%arg0: i32) -> (i32, i32) {
    %c0_i32 = arith.constant 0 : i32
    %c0_i32_0 = arith.constant 0 : i32
    return %arg0, %c0_i32 : i32, i32
  }
  func.func @transform_2(%arg0: i32) -> (i32, i32) {
    %c0_i32 = arith.constant 0 : i32
    %c0_i32_0 = arith.constant 0 : i32
    return %arg0, %c0_i32 : i32, i32
  }
}

</mosaic_0001>

<bundles_post_ra>
// kernel: tpu_custom_call.1
= control target key start
LH: loop header
LB: loop body
LE: loop exit
PB: predicated region body
PF: predicated region fallthrough
CT: control target
= control target key end

     0   :  { %7 = vsyncpa [#allocation3], 0  ;;  %s221_s0 = inlined_call_operand.hbm [shape: f32[12,32], index: 0, kind: input, shape index: {}]   ;;  %s222_s1 = inlined_call_operand.hbm [shape: f32[12,32], index: 1, kind: input, shape index: {}]   ;;  %s223_s2 = inlined_call_operand.vmem [shape: f32[12,1], index: 2, kind: output, shape index: {}]  }
   0x1   :  { %8 = vsyncpa [#allocation5], 0  ;;  %s164_s9 = smov [#allocation2]   ;;  %s116_s13 = scalar_lea.hbm %s221_s0, 256 }
   0x2   :  { %s14_s10 = sshll.u32 %s164_s9, 4  ;;  %p117_p0 = scmp.ne.s32.totalorder %s221_s0, %s116_s13  ;;  %s15_s10 = int_to_ptr.vmem [resolvable:$true] %s14_s10 }
   0x3   :  { %p120_p1 = scmp.lt.u32.totalorder %s116_s13, %s221_s0 }
   0x5   :  { %p122_p2 = pnand %p120_p1, %p117_p0 }
   0x7   :  { %125 = shalt.err (!%p122_p2)
}
   0x8   :  { %s126_s18 = scalar_lea.vmem %s15_s10, 256  ;;  %p131_p4 = scmp.lt.s32.totalorder %s15_s10, %s15_s10 }
   0x9   :  { %p127_p3 = scmp.ne.s32.totalorder %s15_s10, %s126_s18  ;;  %p132_p5 = scmp.lt.s32.totalorder %s126_s18, %s126_s18 }
   0xb   :  { %p133_p6 = por %p132_p5, %p131_p4 }
   0xd   :  { %p134_p7 = pnand %p133_p6, %p127_p3 }
   0xf   :  { %137 = shalt.err (!%p134_p7)
}
  0x10   :  { %s165_s19 = smov 128   ;;  %s166_s20 = smov 8  }
  0x11   :  { %20 = dma.hbm_to_vmem [thread:$0]  %s221_s0, 256, %s15_s10, [#allocation3], %s165_s19, %s165_s19, %s166_s20  }
  0x12   :  { %s167_s23 = smov [#allocation4]   ;;  %s138_s27 = scalar_lea.hbm %s222_s1, 256 }
  0x13   :  { %s26_s24 = sshll.u32 %s167_s23, 4  ;;  %p139_p8 = scmp.ne.s32.totalorder %s222_s1, %s138_s27  ;;  %s27_s24 = int_to_ptr.vmem [resolvable:$true] %s26_s24 }
  0x14   :  { %p142_p9 = scmp.lt.u32.totalorder %s138_s27, %s222_s1 }
  0x16   :  { %p144_p10 = pnand %p142_p9, %p139_p8 }
  0x18   :  { %147 = shalt.err (!%p144_p10)
}
  0x19   :  { %s148_s4 = scalar_lea.vmem %s27_s24, 256  ;;  %p153_p12 = scmp.lt.s32.totalorder %s27_s24, %s27_s24 }
  0x1a   :  { %p149_p11 = scmp.ne.s32.totalorder %s27_s24, %s148_s4  ;;  %p154_p13 = scmp.lt.s32.totalorder %s148_s4, %s148_s4 }
  0x1c   :  { %p155_p0 = por %p154_p13, %p153_p12 }
  0x1e   :  { %p156_p1 = pnand %p155_p0, %p149_p11 }
  0x20   :  { %159 = shalt.err (!%p156_p1)
}
  0x21   :  { %32 = dma.hbm_to_vmem [thread:$0]  %s222_s1, 256, %s27_s24, [#allocation5], %s165_s19, %s165_s19, %s166_s20  }
  0x22   :  { %160 = dma.done.wait [#allocation3], 256  }
  0x23   :  { %161 = vsyncadd [#allocation3], 4294967040 }
  0x24   :  { %162 = dma.done.wait [#allocation5], 256  }
  0x25   :  { %163 = vsyncadd [#allocation5], 4294967040  ;;  %vm43_vm0 = vcmask 261120   ;;  %v40_v0 = vld [vmem:[#allocation2 + $0x8] sm:$0xff]  ;;  %v39_v1 = vld [vmem:[#allocation2] sm:$0xff]  ;;  %v85_v23 = vlaneseq  ;;  %vm95_vm2 = vcmask 7168  }
  0x26   :  { %v47_v2 = vsel %vm43_vm0, %v40_v0, -inf  ;;  %v44_v3 = vsel %vm43_vm0, %v39_v1, -inf  ;;  %v42_v4 = vld [vmem:[#allocation4 + $0x8] sm:$0xff]  ;;  %v41_v18 = vld [vmem:[#allocation4] sm:$0xff] }
  0x27   :  { %48 = vmax.xlane.f32.xlu0 %v47_v2  ;;  %v69_v5 = vsel %vm43_vm0, %v42_v4, 0.0  ;;  %v66_v19 = vsel %vm43_vm0, %v41_v18, 0.0  ;;  %v86_v25 = vshrl.u32 %v85_v23, 7 }
  0x29   :  { %v87_v28 = vadd.s32 8, %v86_v25 }
  0x2b   :  { %45 = vmax.xlane.f32.xlu0 %v44_v3  ;;  %vm92_vm1 = vcmp.lt.s32.totalorder %v87_v28, 12 }
  0x2f   :  { %70 = vadd.xlane.f32.xlu0 %v69_v5 }
  0xb4   :  { %v49_v6 = vpop.xlane.xlu0 %48 }
  0xb5   :  { %v51_v7 = vsub.f32 %v40_v0, %v49_v6 }
  0xb7   :  { %v54_v8 = vmul.f32 1.442695, %v51_v7  ;;  %v73_v9 = vmul.f32 %v51_v7, %v42_v4 }
  0xb8   :  { %v46_v10 = vpop.xlane.xlu0 %45 }
  0xb9   :  { %108 = vpow2.f32 %v54_v8  ;;  %v50_v11 = vsub.f32 %v39_v1, %v46_v10  ;;  %v77_v12 = vsel %vm43_vm0, %v73_v9, 0.0 }
  0xba   :  { %78 = vadd.xlane.f32.xlu0 %v77_v12 }
  0xbb   :  { %v52_v13 = vmul.f32 1.442695, %v50_v11  ;;  %v72_v20 = vmul.f32 %v50_v11, %v41_v18 }
  0xbc   :  { %v71_v26 = vpop.xlane.xlu0 %70 }
  0xbd   :  { %110 = vpow2.f32 %v52_v13  ;;  %v74_v21 = vsel %vm43_vm0, %v72_v20, 0.0 }
  0xc3   :  { %v109_v14 = vpop.eup %108 }
  0xc4   :  { %v59_v15 = vsel %vm43_vm0, %v109_v14, 0.0 }
  0xc5   :  { %60 = vadd.xlane.f32.xlu1 %v59_v15 }
  0xc7   :  { %v111_v16 = vpop.eup %110 }
  0xc8   :  { %v56_v17 = vsel %vm43_vm0, %v111_v16, 0.0 }
  0xc9   :  { %57 = vadd.xlane.f32.xlu1 %v56_v17 }
  0xcd   :  { %67 = vadd.xlane.f32.xlu1 %v66_v19 }
  0xd1   :  { %75 = vadd.xlane.f32.xlu1 %v74_v21 }
 0x147   :  { %v79_v33 = vpop.xlane.xlu0 %78 }
 0x152   :  { %v61_v22 = vpop.xlane.xlu1 %60 }
 0x153   :  { %112 = vlog2.f32 %v61_v22 }
 0x156   :  { %v58_v24 = vpop.xlane.xlu1 %57 }
 0x157   :  { %114 = vlog2.f32 %v58_v24 }
 0x15a   :  { %v68_v30 = vpop.xlane.xlu1 %67 }
 0x15d   :  { %v113_v27 = vpop.eup %112 }
 0x15e   :  { %v65_v29 = vmul.f32 0.6931472, %v113_v27  ;;  %v76_v38 = vpop.xlane.xlu1 %75 }
 0x160   :  { %v81_v31 = vmul.f32 %v71_v26, %v65_v29 }
 0x161   :  { %v115_v32 = vpop.eup %114 }
 0x162   :  { %v83_v34 = vsub.f32 %v81_v31, %v79_v33  ;;  %v63_v35 = vmul.f32 0.6931472, %v115_v32 }
 0x164   :  { %v94_v36 = vsel %vm92_vm1, %v83_v34, 0.0  ;;  %v80_v37 = vmul.f32 %v68_v30, %v63_v35 }
 0x165   :  { %97 = vst.msk [vmem:[%s223_s2 + $0x8] sm:$0xff] %vm95_vm2, %v94_v36 }
 0x166   :  { %v82_v39 = vsub.f32 %v80_v37, %v76_v38 }
 0x168   :  { %96 = vst.msk [vmem:[%s223_s2] sm:$0xff] %vm95_vm2, %v82_v39 }
 0x169   :  { %102 = vsyncpa [#allocation3], 1 }
 0x16a   :  { %103 = vsyncpa [#allocation5], 1 }

</bundles_post_ra>
